<compile_context>
chip_gen: v5e
topology: v5e:2x2
jax: 0.10.0
libtpu: 0.0.40
codegen_flags: <defaults>
</compile_context>

<pallas_src>
import functools

import jax
import jax.numpy as jnp
from jax.experimental import pallas as pl
from jax.experimental.pallas import tpu as pltpu

BN_EPS = 1e-5


def _vmem_budgets():
    """(vmem_limit_bytes, per-step tile working-set budget) chosen per TPU generation."""
    try:
        cap = pltpu.get_tpu_info().vmem_capacity_bytes
    except Exception:
        cap = 64 * 1024 * 1024  # conservative (v7x-sized) fallback
    if cap >= 100 * 1024 * 1024:          # v5e / v6e: 128 MiB VMEM per core
        return 96 * 1024 * 1024, 40 * 1024 * 1024
    return 48 * 1024 * 1024, 20 * 1024 * 1024   # v7x: 64 MiB VMEM per core


def dense_block_kernel(x_ref, wt_ref, gamma_ref, beta_ref, o_ref, *, inv_b):
    # x_ref:     (B_pad, K)       full (zero-padded) batch — BN stats must see every row
    # wt_ref:    (K, tile_H)      weight column slab (pre-transposed at init time), bf16/f32
    # gamma_ref: (1, tile_H)      BatchNorm scale (f32)
    # beta_ref:  (1, tile_H)      BatchNorm shift (f32)
    # o_ref:     (B_pad, tile_H)  output tile (lane-dense when tile_H % 128 == 0)
    # inv_b:     python float, 1 / true_batch (pad rows are zero, so sums are exact)

    # Linear (no bias: exactly cancelled by the batch-mean centering below).
    y = jnp.dot(x_ref[...], wt_ref[...], preferred_element_type=jnp.float32)

    # Column sums on the MXU (ones(1,B) @ y) — keeps the axis-0 reduction off the
    # VPU/XLU tail; only the E[y^2] reduction stays on the vector path.
    ones_row = jnp.ones((1, y.shape[0]), dtype=jnp.float32)
    mean = jnp.dot(ones_row, y, preferred_element_type=jnp.float32) * inv_b
    mean_sq = jnp.sum(y * y, axis=0, keepdims=True) * inv_b
    var = jnp.maximum(mean_sq - mean * mean, 0.0)   # clamp one-pass cancellation

    # Fused normalization:  y_bn = y * s + t.
    s = gamma_ref[...] * jax.lax.rsqrt(var + BN_EPS)
    t = beta_ref[...] - mean * s

    # Dropout = identity (eval), then ReLU.
    o_ref[...] = jnp.maximum(y * s + t, 0.0).astype(o_ref.dtype)


def _pick_tile_h(batch_padded, in_dim, hidden_dim, in_itemsize, budget):
    """Largest H tile (multiple of 128, dividing H) whose per-step working set fits."""
    if hidden_dim % 128 != 0:
        return hidden_dim            # small / non-lane-aligned H: one full-array block

    def working(tile):
        x_bytes = batch_padded * in_dim * in_itemsize          # single-buffered, invariant
        w_bytes = 2 * in_dim * tile * in_itemsize               # double-buffered stream
        gb_bytes = 2 * 2 * tile * 4                              # gamma + beta, f32
        out_bytes = 2 * batch_padded * tile * 4                  # f32 output, double-buffered
        return x_bytes + w_bytes + gb_bytes + out_bytes

    tile = hidden_dim
    while tile >= 128:
        if hidden_dim % tile == 0 and working(tile) <= budget:
            return tile
        tile -= 128
    # TODO(synk): if even tile=128 exceeds the budget (very large B*K), add a K grid
    # axis with a (B, tile_h) accumulator; not needed at the shapes exercised here.
    return 128


def dense_block(x, wt, b, gamma, beta, *, tile_h=None, compute_dtype=jnp.bfloat16):
    """Fused DenseBlock forward.

    x:     (B, input_dim)            activations
    wt:    (input_dim, hidden_dim)   nn.Linear weight, transposed ONCE at init time
    b:     (hidden_dim,)             accepted for signature parity; exactly cancelled by
                                     train-mode BN centering -> unused
    gamma: (hidden_dim,)             BatchNorm1d weight
    beta:  (hidden_dim,)             BatchNorm1d bias
    compute_dtype: dtype the streamed matmul operands are cast to (bf16 by default;
                   accumulation is always f32).
    """
    del b  # exactly cancelled by the batch-mean subtraction inside BatchNorm

    B, K = x.shape
    Kw, H = wt.shape
    assert Kw == K

    # Narrow the streamed operands (weights dominate HBM traffic when B is small).
    xc = x.astype(compute_dtype)
    wtc = wt.astype(compute_dtype)

    # Pad the batch to a full sublane group (zero rows) so stores/reductions are unmasked.
    sub = 16 if jnp.dtype(compute_dtype).itemsize == 2 else 8
    b_pad = ((B + sub - 1) // sub) * sub
    if b_pad != B:
        xc = jnp.pad(xc, ((0, b_pad - B), (0, 0)))

    g2 = gamma.reshape(1, H).astype(jnp.float32)
    be2 = beta.reshape(1, H).astype(jnp.float32)

    vmem_limit, tile_budget = _vmem_budgets()
    if tile_h is None:
        tile_h = _pick_tile_h(b_pad, K, H, jnp.dtype(compute_dtype).itemsize, tile_budget)
    assert H % tile_h == 0, "tile_h must divide hidden_dim"
    grid = (H // tile_h,)

    kernel = functools.partial(dense_block_kernel, inv_b=1.0 / B)

    def call(x_spec):
        return pl.pallas_call(
            kernel,
            out_shape=jax.ShapeDtypeStruct((b_pad, H), jnp.float32),
            grid=grid,
            in_specs=[
                x_spec,                                          # full batch every step
                pl.BlockSpec((K, tile_h), lambda j: (0, j)),     # weight column slab
                pl.BlockSpec((1, tile_h), lambda j: (0, j)),     # gamma
                pl.BlockSpec((1, tile_h), lambda j: (0, j)),     # beta
            ],
            out_specs=pl.BlockSpec((b_pad, tile_h), lambda j: (0, j)),
            compiler_params=pltpu.CompilerParams(
                # H tiles are independent (BN reduces over B, which stays whole per
                # block), so this axis may shard across v7x's two TensorCores.
                dimension_semantics=("parallel",),
                vmem_limit_bytes=vmem_limit,
            ),
        )(xc, wtc, g2, be2)

    # x is block-invariant across the H grid -> single-buffer it (halves its VMEM
    # footprint).  Fall back to the default double-buffered spec if this jax build
    # rejects the pipeline_mode override.
    try:
        out = call(pl.BlockSpec((b_pad, K), lambda j: (0, 0),
                                pipeline_mode=pl.Buffered(1)))
    except Exception:
        out = call(pl.BlockSpec((b_pad, K), lambda j: (0, 0)))

    return out[:B] if b_pad != B else out


def reference(x, w, b, gamma, beta, matmul_dtype=jnp.float32):
    """Pure-JAX reference of the module forward (train-mode BN math, eval dropout)."""
    y = jnp.dot(x.astype(matmul_dtype), w.T.astype(matmul_dtype),
                preferred_element_type=jnp.float32) + b
    mean = jnp.mean(y, axis=0, keepdims=True)
    var = jnp.mean((y - mean) ** 2, axis=0, keepdims=True)
    y = (y - mean) / jnp.sqrt(var + BN_EPS) * gamma + beta
    return jnp.maximum(y, 0.0)


if __name__ == "__main__":
    def init_params(key, in_dim, hid_dim):
        kw, kb, kg, kbe = jax.random.split(key, 4)
        bound = 1.0 / in_dim ** 0.5
        w = jax.random.uniform(kw, (hid_dim, in_dim), jnp.float32, -bound, bound)
        b = jax.random.uniform(kb, (hid_dim,), jnp.float32, -bound, bound)
        gamma = jnp.ones((hid_dim,), jnp.float32) + 0.1 * jax.random.normal(kg, (hid_dim,))
        beta = 0.1 * jax.random.normal(kbe, (hid_dim,))
        return w, b, gamma, beta

    key = jax.random.PRNGKey(0)

    # Case 1: module-sized shapes (batch=8, input_dim=16, hidden_dim=32), f32 path,
    # single block -> tight tolerance vs the f32 reference.
    k1, k2, key = jax.random.split(key, 3)
    B, IN_DIM, HID_DIM = 8, 16, 32
    x = jax.random.normal(k1, (B, IN_DIM), dtype=jnp.float32)
    w, b, gamma, beta = init_params(k2, IN_DIM, HID_DIM)
    wt = jnp.asarray(w.T)            # transpose ONCE at parameter-init time
    out = jax.block_until_ready(
        dense_block(x, wt, b, gamma, beta, compute_dtype=jnp.float32))
    ref = reference(x, w, b, gamma, beta)
    assert out.shape == (B, HID_DIM)
    assert jnp.allclose(out, ref, atol=1e-4, rtol=1e-4), "mismatch vs reference (case 1)"

    # Case 2: lane-dense hidden dim, H tiled with a parallel grid, default bf16 streaming,
    # batch not a multiple of 16 (exercises zero-row padding + true-B divisor).
    k3, k4, key = jax.random.split(key, 3)
    B2, IN2, HID2 = 12, 64, 256
    x2 = jax.random.normal(k3, (B2, IN2), dtype=jnp.float32)
    w2, b2, g2, be2 = init_params(k4, IN2, HID2)
    wt2 = jnp.asarray(w2.T)
    out2 = jax.block_until_ready(dense_block(x2, wt2, b2, g2, be2, tile_h=128))
    ref2 = reference(x2, w2, b2, g2, be2, matmul_dtype=jnp.bfloat16)
    assert out2.shape == (B2, HID2)
    assert jnp.allclose(out2, ref2, atol=2e-2, rtol=2e-2), "mismatch vs reference (case 2)"

    print("KERNEL_OK")
</pallas_src>

<mosaic_0001>
module attributes {stable_mosaic.version = 11 : i64} {
  func.func @dense_block_kernel(%arg0: i32, %arg1: memref<8x16xf32, #tpu.memory_space<vmem>>, %arg2: memref<16x32xf32, #tpu.memory_space<vmem>>, %arg3: memref<1x32xf32, #tpu.memory_space<vmem>>, %arg4: memref<1x32xf32, #tpu.memory_space<vmem>>, %arg5: memref<8x32xf32, #tpu.memory_space<vmem>>) attributes {dimension_semantics = [#tpu.dimension_semantics<parallel>], iteration_bounds = array<i64: 1>, scalar_prefetch = 0 : i64, scratch_operands = 0 : i64, tpu.core_type = #tpu.core_type<tc>, window_params = [{pipeline_mode = #tpu.pipeline_mode<synchronous>, transform_indices = @transform_0, window_bounds = array<i64: 8, 16>}, {transform_indices = @transform_1, window_bounds = array<i64: 16, 32>}, {transform_indices = @transform_2, window_bounds = array<i64: 1, 32>}, {transform_indices = @transform_3, window_bounds = array<i64: 1, 32>}, {transform_indices = @transform_4, window_bounds = array<i64: 8, 32>}]} {
    %c0 = arith.constant 0 : index
    %c0_0 = arith.constant 0 : index
    %0 = vector.load %arg1[%c0, %c0_0] : memref<8x16xf32, #tpu.memory_space<vmem>>, vector<8x16xf32>
    %c0_1 = arith.constant 0 : index
    %c0_2 = arith.constant 0 : index
    %1 = vector.load %arg2[%c0_1, %c0_2] : memref<16x32xf32, #tpu.memory_space<vmem>>, vector<16x32xf32>
    %cst = arith.constant dense<0.000000e+00> : vector<8x32xf32>
    %2 = tpu.matmul %0, %1, %cst {dimension_numbers = #tpu.dot_dimension_numbers<[1], [0], [0], [1], [0, 0, 1, 1], [], []>} : vector<8x16xf32>, vector<16x32xf32>, vector<8x32xf32> -> vector<8x32xf32>
    %cst_3 = arith.constant 1.000000e+00 : f32
    %3 = vector.broadcast %cst_3 : f32 to vector<1x8xf32>
    %cst_4 = arith.constant dense<0.000000e+00> : vector<1x32xf32>
    %4 = tpu.matmul %3, %2, %cst_4 {dimension_numbers = #tpu.dot_dimension_numbers<[1], [0], [0], [1], [0, 0, 1, 1], [], []>} : vector<1x8xf32>, vector<8x32xf32>, vector<1x32xf32> -> vector<1x32xf32>
    %cst_5 = arith.constant 1.250000e-01 : f32
    %5 = vector.broadcast %cst_5 : f32 to vector<1x32xf32>
    %6 = arith.mulf %4, %5 : vector<1x32xf32>
    %7 = arith.mulf %2, %2 : vector<8x32xf32>
    %cst_6 = arith.constant dense<0.000000e+00> : vector<32xf32>
    %8 = vector.multi_reduction <add>, %7, %cst_6 [0] : vector<8x32xf32> to vector<32xf32>
    %9 = vector.shape_cast %8 : vector<32xf32> to vector<1x32xf32>
    %cst_7 = arith.constant 1.250000e-01 : f32
    %10 = vector.broadcast %cst_7 : f32 to vector<1x32xf32>
    %11 = arith.mulf %9, %10 : vector<1x32xf32>
    %12 = arith.mulf %6, %6 : vector<1x32xf32>
    %13 = arith.subf %11, %12 : vector<1x32xf32>
    %cst_8 = arith.constant 0.000000e+00 : f32
    %14 = vector.broadcast %cst_8 : f32 to vector<1x32xf32>
    %15 = arith.maximumf %13, %14 : vector<1x32xf32>
    %c0_9 = arith.constant 0 : index
    %c0_10 = arith.constant 0 : index
    %16 = vector.load %arg3[%c0_9, %c0_10] : memref<1x32xf32, #tpu.memory_space<vmem>>, vector<1x32xf32>
    %cst_11 = arith.constant 9.99999974E-6 : f32
    %17 = vector.broadcast %cst_11 : f32 to vector<1x32xf32>
    %18 = arith.addf %15, %17 : vector<1x32xf32>
    %19 = math.rsqrt %18 : vector<1x32xf32>
    %20 = arith.mulf %16, %19 : vector<1x32xf32>
    %c0_12 = arith.constant 0 : index
    %c0_13 = arith.constant 0 : index
    %21 = vector.load %arg4[%c0_12, %c0_13] : memref<1x32xf32, #tpu.memory_space<vmem>>, vector<1x32xf32>
    %22 = arith.mulf %6, %20 : vector<1x32xf32>
    %23 = arith.subf %21, %22 : vector<1x32xf32>
    %24 = vector.broadcast %20 : vector<1x32xf32> to vector<8x32xf32>
    %25 = arith.mulf %2, %24 : vector<8x32xf32>
    %26 = vector.broadcast %23 : vector<1x32xf32> to vector<8x32xf32>
    %27 = arith.addf %25, %26 : vector<8x32xf32>
    %cst_14 = arith.constant 0.000000e+00 : f32
    %28 = vector.broadcast %cst_14 : f32 to vector<8x32xf32>
    %29 = arith.maximumf %27, %28 : vector<8x32xf32>
    %c0_15 = arith.constant 0 : index
    %c0_16 = arith.constant 0 : index
    %30 = vector.load %arg5[%c0_15, %c0_16] : memref<8x32xf32, #tpu.memory_space<vmem>>, vector<8x32xf32>
    tpu.vector_store %arg5[%c0_15, %c0_16], %29 {strides = array<i32>} : memref<8x32xf32, #tpu.memory_space<vmem>>, vector<8x32xf32>,
    return
  }
  func.func @transform_0(%arg0: i32) -> (i32, i32) {
    %c0_i32 = arith.constant 0 : i32
    %c0_i32_0 = arith.constant 0 : i32
    %c0_i32_1 = arith.constant 0 : i32
    return %c0_i32, %c0_i32_0 : i32, i32
  }
  func.func @transform_1(%arg0: i32) -> (i32, i32) {
    %c0_i32 = arith.constant 0 : i32
    %c0_i32_0 = arith.constant 0 : i32
    return %c0_i32, %arg0 : i32, i32
  }
  func.func @transform_2(%arg0: i32) -> (i32, i32) {
    %c0_i32 = arith.constant 0 : i32
    %c0_i32_0 = arith.constant 0 : i32
    return %c0_i32, %arg0 : i32, i32
  }
  func.func @transform_3(%arg0: i32) -> (i32, i32) {
    %c0_i32 = arith.constant 0 : i32
    %c0_i32_0 = arith.constant 0 : i32
    return %c0_i32, %arg0 : i32, i32
  }
  func.func @transform_4(%arg0: i32) -> (i32, i32) {
    %c0_i32 = arith.constant 0 : i32
    %c0_i32_0 = arith.constant 0 : i32
    return %c0_i32, %arg0 : i32, i32
  }
}

module attributes {stable_mosaic.version = 11 : i64} {
  func.func @dense_block_kernel(%arg0: i32, %arg1: memref<8x16xf32, #tpu.memory_space<vmem>>, %arg2: memref<16x32xf32, #tpu.memory_space<vmem>>, %arg3: memref<1x32xf32, #tpu.memory_space<vmem>>, %arg4: memref<1x32xf32, #tpu.memory_space<vmem>>, %arg5: memref<8x32xf32, #tpu.memory_space<vmem>>) attributes {dimension_semantics = [#tpu.dimension_semantics<parallel>], iteration_bounds = array<i64: 1>, scalar_prefetch = 0 : i64, scratch_operands = 0 : i64, tpu.core_type = #tpu.core_type<tc>, window_params = [{pipeline_mode = #tpu.pipeline_mode<synchronous>, transform_indices = @transform_0, window_bounds = array<i64: 8, 16>}, {transform_indices = @transform_1, window_bounds = array<i64: 16, 32>}, {transform_indices = @transform_2, window_bounds = array<i64: 1, 32>}, {transform_indices = @transform_3, window_bounds = array<i64: 1, 32>}, {transform_indices = @transform_4, window_bounds = array<i64: 8, 32>}]} {
    %c0 = arith.constant 0 : index
    %c0_0 = arith.constant 0 : index
    %0 = vector.load %arg1[%c0, %c0_0] : memref<8x16xf32, #tpu.memory_space<vmem>>, vector<8x16xf32>
    %c0_1 = arith.constant 0 : index
    %c0_2 = arith.constant 0 : index
    %1 = vector.load %arg2[%c0_1, %c0_2] : memref<16x32xf32, #tpu.memory_space<vmem>>, vector<16x32xf32>
    %cst = arith.constant dense<0.000000e+00> : vector<8x32xf32>
    %2 = tpu.matmul %0, %1, %cst {dimension_numbers = #tpu.dot_dimension_numbers<[1], [0], [0], [1], [0, 0, 1, 1], [], []>} : vector<8x16xf32>, vector<16x32xf32>, vector<8x32xf32> -> vector<8x32xf32>
    %cst_3 = arith.constant 1.000000e+00 : f32
    %3 = vector.broadcast %cst_3 : f32 to vector<1x8xf32>
    %cst_4 = arith.constant dense<0.000000e+00> : vector<1x32xf32>
    %4 = tpu.matmul %3, %2, %cst_4 {dimension_numbers = #tpu.dot_dimension_numbers<[1], [0], [0], [1], [0, 0, 1, 1], [], []>} : vector<1x8xf32>, vector<8x32xf32>, vector<1x32xf32> -> vector<1x32xf32>
    %cst_5 = arith.constant 1.250000e-01 : f32
    %5 = vector.broadcast %cst_5 : f32 to vector<1x32xf32>
    %6 = arith.mulf %4, %5 : vector<1x32xf32>
    %7 = arith.mulf %2, %2 : vector<8x32xf32>
    %cst_6 = arith.constant dense<0.000000e+00> : vector<32xf32>
    %8 = vector.multi_reduction <add>, %7, %cst_6 [0] : vector<8x32xf32> to vector<32xf32>
    %9 = vector.shape_cast %8 : vector<32xf32> to vector<1x32xf32>
    %cst_7 = arith.constant 1.250000e-01 : f32
    %10 = vector.broadcast %cst_7 : f32 to vector<1x32xf32>
    %11 = arith.mulf %9, %10 : vector<1x32xf32>
    %12 = arith.mulf %6, %6 : vector<1x32xf32>
    %13 = arith.subf %11, %12 : vector<1x32xf32>
    %cst_8 = arith.constant 0.000000e+00 : f32
    %14 = vector.broadcast %cst_8 : f32 to vector<1x32xf32>
    %15 = arith.maximumf %13, %14 : vector<1x32xf32>
    %c0_9 = arith.constant 0 : index
    %c0_10 = arith.constant 0 : index
    %16 = vector.load %arg3[%c0_9, %c0_10] : memref<1x32xf32, #tpu.memory_space<vmem>>, vector<1x32xf32>
    %cst_11 = arith.constant 9.99999974E-6 : f32
    %17 = vector.broadcast %cst_11 : f32 to vector<1x32xf32>
    %18 = arith.addf %15, %17 : vector<1x32xf32>
    %19 = math.rsqrt %18 : vector<1x32xf32>
    %20 = arith.mulf %16, %19 : vector<1x32xf32>
    %c0_12 = arith.constant 0 : index
    %c0_13 = arith.constant 0 : index
    %21 = vector.load %arg4[%c0_12, %c0_13] : memref<1x32xf32, #tpu.memory_space<vmem>>, vector<1x32xf32>
    %22 = arith.mulf %6, %20 : vector<1x32xf32>
    %23 = arith.subf %21, %22 : vector<1x32xf32>
    %24 = vector.broadcast %20 : vector<1x32xf32> to vector<8x32xf32>
    %25 = arith.mulf %2, %24 : vector<8x32xf32>
    %26 = vector.broadcast %23 : vector<1x32xf32> to vector<8x32xf32>
    %27 = arith.addf %25, %26 : vector<8x32xf32>
    %cst_14 = arith.constant 0.000000e+00 : f32
    %28 = vector.broadcast %cst_14 : f32 to vector<8x32xf32>
    %29 = arith.maximumf %27, %28 : vector<8x32xf32>
    %c0_15 = arith.constant 0 : index
    %c0_16 = arith.constant 0 : index
    %30 = vector.load %arg5[%c0_15, %c0_16] : memref<8x32xf32, #tpu.memory_space<vmem>>, vector<8x32xf32>
    tpu.vector_store %arg5[%c0_15, %c0_16], %29 {strides = array<i32>} : memref<8x32xf32, #tpu.memory_space<vmem>>, vector<8x32xf32>,
    return
  }
  func.func @transform_0(%arg0: i32) -> (i32, i32) {
    %c0_i32 = arith.constant 0 : i32
    %c0_i32_0 = arith.constant 0 : i32
    %c0_i32_1 = arith.constant 0 : i32
    return %c0_i32, %c0_i32_0 : i32, i32
  }
  func.func @transform_1(%arg0: i32) -> (i32, i32) {
    %c0_i32 = arith.constant 0 : i32
    %c0_i32_0 = arith.constant 0 : i32
    return %c0_i32, %arg0 : i32, i32
  }
  func.func @transform_2(%arg0: i32) -> (i32, i32) {
    %c0_i32 = arith.constant 0 : i32
    %c0_i32_0 = arith.constant 0 : i32
    return %c0_i32, %arg0 : i32, i32
  }
  func.func @transform_3(%arg0: i32) -> (i32, i32) {
    %c0_i32 = arith.constant 0 : i32
    %c0_i32_0 = arith.constant 0 : i32
    return %c0_i32, %arg0 : i32, i32
  }
  func.func @transform_4(%arg0: i32) -> (i32, i32) {
    %c0_i32 = arith.constant 0 : i32
    %c0_i32_0 = arith.constant 0 : i32
    return %c0_i32, %arg0 : i32, i32
  }
}

</mosaic_0001>

<bundles_post_ra>
// kernel: tpu_custom_call.1
= control target key start
LH: loop header
LB: loop body
LE: loop exit
PB: predicated region body
PF: predicated region fallthrough
CT: control target
= control target key end

     0   :  { %9 = vsyncpa [#allocation3], 0  ;;  %s293_s0 = inlined_call_operand.hbm [shape: f32[8,16], index: 0, kind: input, shape index: {}]   ;;  %s294_s1 = inlined_call_operand.hbm [shape: f32[16,32], index: 1, kind: input, shape index: {}]   ;;  %s295_s2 = inlined_call_operand.vmem [shape: f32[1,32], index: 2, kind: input, shape index: {}]   ;;  %s296_s3 = inlined_call_operand.vmem [shape: f32[1,32], index: 3, kind: input, shape index: {}]   ;;  %s297_s4 = inlined_call_operand.hbm [shape: f32[8,32], index: 4, kind: output, shape index: {}]  }
   0x1   :  { %10 = vsyncpa [#allocation6], 0 }
   0x2   :  { %11 = vsyncpa [#allocation4], 0  ;;  %s17_s17 = sshll.u32 %s293_s0, 4  ;;  %s245_s18 = smov [#allocation2]   ;;  %s18_s17 = int_to_ptr.hbm [resolvable:$true] %s17_s17 }
   0x3   :  { %s19_s19 = sshll.u32 %s245_s18, 4  ;;  %s27_s22 = sshll.u32 %s294_s1, 4  ;;  %s20_s19 = int_to_ptr.vmem [resolvable:$true] %s19_s19  ;;  %s28_s22 = int_to_ptr.hbm [resolvable:$true] %s27_s22 }
   0x4   :  { %22 = dma.hbm_to_vmem [thread:$0]  %s18_s17, 128, %s20_s19, [#allocation3]  }
   0x5   :  { %s246_s23 = smov [#allocation5]   ;;  %s247_s25 = smov 128  }
   0x6   :  { %s29_s24 = sshll.u32 %s246_s23, 4  ;;  %s248_s26 = smov 8   ;;  %s30_s24 = int_to_ptr.vmem [resolvable:$true] %s29_s24 }
   0x7   :  { %35 = dma.hbm_to_vmem [thread:$0]  %s28_s22, 256, %s30_s24, [#allocation6], %s247_s25, %s247_s25, %s248_s26  }
   0x8   :  { %239 = dma.done.wait [#allocation3], 128  }
   0x9   :  { %240 = vsyncadd [#allocation3], 4294967168 }
   0xa   :  { %241 = dma.done.wait [#allocation6], 256  }
   0xb   :  { %242 = vsyncadd [#allocation6], 4294967040  ;;  %v50_v0 = vld [vmem:[#allocation5 + $0x8] sm:$0xff]  ;;  %v49_v1 = vld [vmem:[#allocation5] sm:$0xff]  ;;  %vm51_vm0 = vcmask 130048   ;;  %vm75_vm1 = vcmask 64512  }
   0xc   :  { %69 = vmatpush.msra.mxu0 %v50_v0  ;;  %v48_v2 = vld [vmem:[#allocation2] sm:$0xff]  ;;  %v249_v4 = vmov 1.0   ;;  %vm101_vm2 = vcmask 261120   ;;  %s250_s29 = smov [#allocation7]  }
   0xd   :  { %v113_v25 = vld [vmem:[%s295_s2] sm:$0x1]  ;;  %s144_s30 = sshll.u32 %s250_s29, 4  ;;  %s146_s2 = sshll.u32 %s297_s4, 4  ;;  %s145_s30 = int_to_ptr.vmem [resolvable:$true] %s144_s30  ;;  %s147_s2 = int_to_ptr.hbm [resolvable:$true] %s146_s2 }
   0xe   :  { %70 = vmatpush.msra.mxu0 %v49_v1  ;;  %v126_v29 = vld [vmem:[%s296_s3] sm:$0x1] }
   0xf   :  { %157 = vmatmul.msk.f32.vlgmr.msra.gmra.mxu0 %vm51_vm0, %v48_v2 }
  0x8c   :  { %v72_v3 = vpop.f32.mrf.mxu0 }
  0x8d   :  { %94 = vmatpush.msra.mxu1 %v72_v3  ;;  %v100_v5 = vmul.f32 %v72_v3, %v72_v3 }
  0x8e   :  { %158 = vmatmul.msk.f32.vlgmr.msra.gmra.mxu1 %vm75_vm1, %v249_v4 }
  0x8f   :  { %v102_v6 = vsel %vm101_vm2, %v100_v5, 0.0 }
  0x90   :  { %v103_v7 = vrot.slane %v102_v6, 4 }
  0x92   :  { %v104_v8 = vadd.f32 %v103_v7, %v102_v6 }
  0x94   :  { %v105_v9 = vrot.slane %v104_v8, 2 }
  0x96   :  { %v106_v10 = vadd.f32 %v105_v9, %v104_v8 }
  0x98   :  { %v107_v11 = vrot.slane %v106_v10, 1 }
  0x9a   :  { %v108_v12 = vadd.f32 %v107_v11, %v106_v10 }
  0x9c   :  { %v109_v15 = vmul.f32 0.125, %v108_v12 }
 0x10b   :  { %v96_v13 = vpop.f32.mrf.mxu1 }
 0x10c   :  { %v99_v14 = vmul.f32 0.125, %v96_v13 }
 0x10e   :  { %v110_v16 = vmul.f32 %v99_v14, %v99_v14 }
 0x110   :  { %v111_v17 = vsub.f32 %v109_v15, %v110_v16 }
 0x112   :  { %v112_v18 = vmax.f32 %v111_v17, 0.0 }
 0x114   :  { %v114_v19 = vadd.f32 1e-05, %v112_v18 }
 0x116   :  { %165 = vrsqrt.f32 %v114_v19  ;;  %vm121_vm4 = vweird.f32 %v114_v19 }
 0x11c   :  { %v166_v20 = vpop.eup %165 }
 0x11d   :  { %v116_v21 = vmul.f32 %v166_v20, %v114_v19  ;;  %vm122_vm3 = vweird.f32 %v166_v20 }
 0x11e   :  { %vm123_vm5 = vmor %vm121_vm4, %vm122_vm3 }
 0x11f   :  { %v117_v22 = vmul.f32 %v166_v20, %v116_v21 }
 0x121   :  { %v118_v23 = vmul.f32 0.5, %v117_v22 }
 0x123   :  { %v119_v24 = vsub.f32 1.5, %v118_v23 }
 0x125   :  { %v120_v26 = vmul.f32 %v166_v20, %v119_v24 }
 0x127   :  { %v124_v27 = vsel %vm123_vm5, %v166_v20, %v120_v26 }
 0x128   :  { %v125_v28 = vmul.f32 %v124_v27, %v113_v25 }
 0x12a   :  { %v127_v30 = vmul.f32 %v125_v28, %v99_v14  ;;  %v130_v31 = vperm.slane %v125_v28, 0 }
 0x12c   :  { %v128_v32 = vsub.f32 %v126_v29, %v127_v30  ;;  %v132_v33 = vmul.f32 %v130_v31, %v72_v3 }
 0x12e   :  { %v134_v34 = vperm.slane %v128_v32, 0 }
 0x130   :  { %v136_v35 = vadd.f32 %v134_v34, %v132_v33 }
 0x132   :  { %v137_v36 = vmax.f32 %v136_v35, 0.0 }
 0x134   :  { %138 = vst.msk [vmem:[#allocation7] sm:$0xff] %vm101_vm2, %v137_v36 }
 0x135   :  { %149 = dma.vmem_to_hbm [thread:$0]  %s145_s30, 128, %s147_s2, [#allocation4]  }
 0x136   :  { %243 = dma.done.wait [#allocation4], 128  }
 0x137   :  { %244 = vsyncadd [#allocation4], 4294967168 }
 0x138   :  { %154 = vsyncpa [#allocation3], 1 }
 0x139   :  { %155 = vsyncpa [#allocation6], 1 }
 0x13a   :  { %156 = vsyncpa [#allocation4], 1 }

// kernel: tpu_custom_call.1
= control target key start
LH: loop header
LB: loop body
LE: loop exit
PB: predicated region body
PF: predicated region fallthrough
CT: control target
= control target key end

     0   :  { %9 = vsyncpa [#allocation3], 0  ;;  %s293_s0 = inlined_call_operand.hbm [shape: f32[8,16], index: 0, kind: input, shape index: {}]   ;;  %s294_s1 = inlined_call_operand.hbm [shape: f32[16,32], index: 1, kind: input, shape index: {}]   ;;  %s295_s2 = inlined_call_operand.vmem [shape: f32[1,32], index: 2, kind: input, shape index: {}]   ;;  %s296_s3 = inlined_call_operand.vmem [shape: f32[1,32], index: 3, kind: input, shape index: {}]   ;;  %s297_s4 = inlined_call_operand.hbm [shape: f32[8,32], index: 4, kind: output, shape index: {}]  }
   0x1   :  { %10 = vsyncpa [#allocation6], 0 }
   0x2   :  { %11 = vsyncpa [#allocation4], 0  ;;  %s17_s17 = sshll.u32 %s293_s0, 4  ;;  %s245_s18 = smov [#allocation2]   ;;  %s18_s17 = int_to_ptr.hbm [resolvable:$true] %s17_s17 }
   0x3   :  { %s19_s19 = sshll.u32 %s245_s18, 4  ;;  %s27_s22 = sshll.u32 %s294_s1, 4  ;;  %s20_s19 = int_to_ptr.vmem [resolvable:$true] %s19_s19  ;;  %s28_s22 = int_to_ptr.hbm [resolvable:$true] %s27_s22 }
   0x4   :  { %22 = dma.hbm_to_vmem [thread:$0]  %s18_s17, 128, %s20_s19, [#allocation3]  }
   0x5   :  { %s246_s23 = smov [#allocation5]   ;;  %s247_s25 = smov 128  }
   0x6   :  { %s29_s24 = sshll.u32 %s246_s23, 4  ;;  %s248_s26 = smov 8   ;;  %s30_s24 = int_to_ptr.vmem [resolvable:$true] %s29_s24 }
   0x7   :  { %35 = dma.hbm_to_vmem [thread:$0]  %s28_s22, 256, %s30_s24, [#allocation6], %s247_s25, %s247_s25, %s248_s26  }
   0x8   :  { %239 = dma.done.wait [#allocation3], 128  }
   0x9   :  { %240 = vsyncadd [#allocation3], 4294967168 }
   0xa   :  { %241 = dma.done.wait [#allocation6], 256  }
   0xb   :  { %242 = vsyncadd [#allocation6], 4294967040  ;;  %v50_v0 = vld [vmem:[#allocation5 + $0x8] sm:$0xff]  ;;  %v49_v1 = vld [vmem:[#allocation5] sm:$0xff]  ;;  %vm51_vm0 = vcmask 130048   ;;  %vm75_vm1 = vcmask 64512  }
   0xc   :  { %69 = vmatpush.msra.mxu0 %v50_v0  ;;  %v48_v2 = vld [vmem:[#allocation2] sm:$0xff]  ;;  %v249_v4 = vmov 1.0   ;;  %vm101_vm2 = vcmask 261120   ;;  %s250_s29 = smov [#allocation7]  }
   0xd   :  { %v113_v25 = vld [vmem:[%s295_s2] sm:$0x1]  ;;  %s144_s30 = sshll.u32 %s250_s29, 4  ;;  %s146_s2 = sshll.u32 %s297_s4, 4  ;;  %s145_s30 = int_to_ptr.vmem [resolvable:$true] %s144_s30  ;;  %s147_s2 = int_to_ptr.hbm [resolvable:$true] %s146_s2 }
   0xe   :  { %70 = vmatpush.msra.mxu0 %v49_v1  ;;  %v126_v29 = vld [vmem:[%s296_s3] sm:$0x1] }
   0xf   :  { %157 = vmatmul.msk.f32.vlgmr.msra.gmra.mxu0 %vm51_vm0, %v48_v2 }
  0x8c   :  { %v72_v3 = vpop.f32.mrf.mxu0 }
  0x8d   :  { %94 = vmatpush.msra.mxu1 %v72_v3  ;;  %v100_v5 = vmul.f32 %v72_v3, %v72_v3 }
  0x8e   :  { %158 = vmatmul.msk.f32.vlgmr.msra.gmra.mxu1 %vm75_vm1, %v249_v4 }
  0x8f   :  { %v102_v6 = vsel %vm101_vm2, %v100_v5, 0.0 }
  0x90   :  { %v103_v7 = vrot.slane %v102_v6, 4 }
  0x92   :  { %v104_v8 = vadd.f32 %v103_v7, %v102_v6 }
  0x94   :  { %v105_v9 = vrot.slane %v104_v8, 2 }
  0x96   :  { %v106_v10 = vadd.f32 %v105_v9, %v104_v8 }
  0x98   :  { %v107_v11 = vrot.slane %v106_v10, 1 }
  0x9a   :  { %v108_v12 = vadd.f32 %v107_v11, %v106_v10 }
  0x9c   :  { %v109_v15 = vmul.f32 0.125, %v108_v12 }
 0x10b   :  { %v96_v13 = vpop.f32.mrf.mxu1 }
 0x10c   :  { %v99_v14 = vmul.f32 0.125, %v96_v13 }
 0x10e   :  { %v110_v16 = vmul.f32 %v99_v14, %v99_v14 }
 0x110   :  { %v111_v17 = vsub.f32 %v109_v15, %v110_v16 }
 0x112   :  { %v112_v18 = vmax.f32 %v111_v17, 0.0 }
 0x114   :  { %v114_v19 = vadd.f32 1e-05, %v112_v18 }
 0x116   :  { %165 = vrsqrt.f32 %v114_v19  ;;  %vm121_vm4 = vweird.f32 %v114_v19 }
 0x11c   :  { %v166_v20 = vpop.eup %165 }
 0x11d   :  { %v116_v21 = vmul.f32 %v166_v20, %v114_v19  ;;  %vm122_vm3 = vweird.f32 %v166_v20 }
 0x11e   :  { %vm123_vm5 = vmor %vm121_vm4, %vm122_vm3 }
 0x11f   :  { %v117_v22 = vmul.f32 %v166_v20, %v116_v21 }
 0x121   :  { %v118_v23 = vmul.f32 0.5, %v117_v22 }
 0x123   :  { %v119_v24 = vsub.f32 1.5, %v118_v23 }
 0x125   :  { %v120_v26 = vmul.f32 %v166_v20, %v119_v24 }
 0x127   :  { %v124_v27 = vsel %vm123_vm5, %v166_v20, %v120_v26 }
 0x128   :  { %v125_v28 = vmul.f32 %v124_v27, %v113_v25 }
 0x12a   :  { %v127_v30 = vmul.f32 %v125_v28, %v99_v14  ;;  %v130_v31 = vperm.slane %v125_v28, 0 }
 0x12c   :  { %v128_v32 = vsub.f32 %v126_v29, %v127_v30  ;;  %v132_v33 = vmul.f32 %v130_v31, %v72_v3 }
 0x12e   :  { %v134_v34 = vperm.slane %v128_v32, 0 }
 0x130   :  { %v136_v35 = vadd.f32 %v134_v34, %v132_v33 }
 0x132   :  { %v137_v36 = vmax.f32 %v136_v35, 0.0 }
 0x134   :  { %138 = vst.msk [vmem:[#allocation7] sm:$0xff] %vm101_vm2, %v137_v36 }
 0x135   :  { %149 = dma.vmem_to_hbm [thread:$0]  %s145_s30, 128, %s147_s2, [#allocation4]  }
 0x136   :  { %243 = dma.done.wait [#allocation4], 128  }
 0x137   :  { %244 = vsyncadd [#allocation4], 4294967168 }
 0x138   :  { %154 = vsyncpa [#allocation3], 1 }
 0x139   :  { %155 = vsyncpa [#allocation6], 1 }
 0x13a   :  { %156 = vsyncpa [#allocation4], 1 }

</bundles_post_ra>
